<compile_context>
chip_gen: v7x
topology: tpu7x:2x2x1
jax: 0.10.0
libtpu: 0.0.40
codegen_flags: <defaults>
</compile_context>

<pallas_src>
import functools

import jax
import jax.numpy as jnp
from jax import lax
from jax.experimental import pallas as pl
from jax.experimental.pallas import tpu as pltpu


# ---------------------------------------------------------------------------
# Kernel 1: patch-merge conv as (Cout,K)@(K,tile_l) matmul, fused with
#           BatchNorm partial statistics accumulated in VMEM scratch.
# ---------------------------------------------------------------------------
def _merge_stats_kernel(xp_ref, w_ref, y_ref, st_ref, s1_acc, s2_acc,
                        *, tile_l, total_l):
    # xp_ref: (K, tile_l)     bf16 patch columns (one batch row / spatial tile)
    # w_ref : (Cout, K)       bf16 conv weight (same block every step -> resident)
    # y_ref : (Cout, tile_l)  bf16 conv output tile (channel-major, lane-dense)
    # st_ref: (Cout, 2)       f32 per-batch-row [sum, sum_sq] (written once)
    # s?_acc: (Cout, 1)       f32 scratch accumulators carried across the t axis
    t = pl.program_id(1)
    n_t = pl.num_programs(1)

    @pl.when(t == 0)
    def _init():
        s1_acc[...] = jnp.zeros_like(s1_acc)
        s2_acc[...] = jnp.zeros_like(s2_acc)

    # f32 MXU accumulation; stats are taken from the f32 result, then y is
    # stored once as bf16 (pure intermediate: written once, read once).
    y = jnp.dot(w_ref[...], xp_ref[...], preferred_element_type=jnp.float32)
    y_ref[...] = y.astype(y_ref.dtype)

    def _accum(yv):
        s1_acc[...] += jnp.sum(yv, axis=1, keepdims=True)
        s2_acc[...] += jnp.sum(yv * yv, axis=1, keepdims=True)

    if total_l % tile_l == 0:
        _accum(y)                               # no padded edge tile: never mask
    else:
        @pl.when(t == n_t - 1)
        def _edge():                            # mask padded lanes on last tile
            lane = lax.broadcasted_iota(jnp.int32, y.shape, 1)
            valid = (t * tile_l + lane) < total_l
            _accum(jnp.where(valid, y, 0.0))

        @pl.when(t != n_t - 1)
        def _interior():
            _accum(y)

    @pl.when(t == n_t - 1)
    def _finalize():
        st_ref[:, 0:1] = s1_acc[...]
        st_ref[:, 1:2] = s2_acc[...]


def merge_conv_with_stats(xp, w2, *, tile_l, vmem_limit):
    Nb, K, Lb = xp.shape
    Cout = w2.shape[0]
    T = pl.cdiv(Lb, tile_l)
    kernel = functools.partial(_merge_stats_kernel, tile_l=tile_l, total_l=Lb)
    return pl.pallas_call(
        kernel,
        out_shape=(
            jax.ShapeDtypeStruct((Nb, Cout, Lb), jnp.bfloat16),   # conv output y
            jax.ShapeDtypeStruct((Nb, Cout, 2), jnp.float32),     # per-row stats
        ),
        grid_spec=pltpu.PrefetchScalarGridSpec(
            num_scalar_prefetch=0,
            grid=(Nb, T),
            in_specs=[
                pl.BlockSpec((None, K, tile_l), lambda n, t: (n, 0, t)),
                pl.BlockSpec((Cout, K), lambda n, t: (0, 0)),
            ],
            out_specs=(
                pl.BlockSpec((None, Cout, tile_l), lambda n, t: (n, 0, t)),
                pl.BlockSpec((None, Cout, 2), lambda n, t: (n, 0, 0)),
            ),
            scratch_shapes=[
                pltpu.VMEM((Cout, 1), jnp.float32),
                pltpu.VMEM((Cout, 1), jnp.float32),
            ],
        ),
        compiler_params=pltpu.CompilerParams(
            # t carries the stats accumulator -> "arbitrary"; n is independent.
            # TODO(synk): on v7x with Nb == 1 split t into two parallel halves
            # so both TensorCores get work.
            dimension_semantics=("parallel", "arbitrary"),
            vmem_limit_bytes=vmem_limit),
    )(xp, w2)


# ---------------------------------------------------------------------------
# Kernel 2: apply the per-channel BatchNorm scale/shift (pure bandwidth).
# ---------------------------------------------------------------------------
def _affine_kernel(y_ref, sc_ref, sh_ref, z_ref):
    y = y_ref[...].astype(jnp.float32)
    z_ref[...] = (y * sc_ref[...] + sh_ref[...]).astype(z_ref.dtype)


def apply_norm(y, scale_c, shift_c, *, tile_l, out_dtype, vmem_limit):
    Nb, Cout, Lb = y.shape
    T = pl.cdiv(Lb, tile_l)
    # NOTE: input_output_aliases would only apply if out_dtype matched the bf16
    # intermediate; here the output follows x.dtype so no aliasing is possible.
    return pl.pallas_call(
        _affine_kernel,
        out_shape=jax.ShapeDtypeStruct((Nb, Cout, Lb), out_dtype),
        grid_spec=pltpu.PrefetchScalarGridSpec(
            num_scalar_prefetch=0,
            grid=(Nb, T),
            in_specs=[
                pl.BlockSpec((None, Cout, tile_l), lambda n, t: (n, 0, t)),
                pl.BlockSpec((Cout, 1), lambda n, t: (0, 0)),
                pl.BlockSpec((Cout, 1), lambda n, t: (0, 0)),
            ],
            out_specs=pl.BlockSpec((None, Cout, tile_l), lambda n, t: (n, 0, t)),
        ),
        compiler_params=pltpu.CompilerParams(
            dimension_semantics=("parallel", "parallel"),
            vmem_limit_bytes=vmem_limit),
    )(y, scale_c, shift_c)


# ---------------------------------------------------------------------------
# Tile selection: largest lane-dense (multiple-of-128) tile within VMEM budget.
# ---------------------------------------------------------------------------
def _pick_tile(Lb, *, per_col_bytes, fixed_bytes, budget_bytes, cap):
    if Lb <= 256:
        return Lb                                   # tiny: one full-width block
    t = max((budget_bytes - fixed_bytes) // max(per_col_bytes, 1), 128)
    t = min(t, cap, Lb)
    if t < Lb:
        t = max((t // 128) * 128, 128)
    return int(t)


# ---------------------------------------------------------------------------
# Wrapper matching PatchMerging.forward (Conv2d k=stride=scale, bias=False,
# followed by BatchNorm2d in training mode: batch statistics, biased variance).
# ---------------------------------------------------------------------------
def patch_merging_forward(x, weight, gamma, beta, scale, *, eps=1e-5,
                          vmem_limit_bytes=48 * 1024 * 1024):
    N, Cin, H, W = x.shape
    Cout = weight.shape[0]
    s = scale
    Hp, Wp = H // s, W // s
    L = Hp * Wp
    K = Cin * s * s

    # Single XLA-side rearrange (NCHW -> patch matrix), emitted directly in bf16
    # so the extra HBM pass is half-width.  K is ordered (ci, kh, kw) to match
    # weight.reshape(Cout, K); because kernel == stride, the conv is exactly
    # y[n, co, l] = W2[co, :] @ xp[n, :, l].
    x6 = x.reshape(N, Cin, Hp, s, Wp, s)
    if L >= 128:
        # Per-batch layout: output is already NCHW-ordered -> free final reshape.
        xp = (x6.transpose(0, 1, 3, 5, 2, 4)
                .reshape(N, K, L).astype(jnp.bfloat16))
        Nb, Lb = N, L
    else:
        # Small spatial extent: fold the batch into the lane dimension so both
        # kernels store lane-dense slabs; the tiny output transpose at the end
        # is negligible at these sizes.
        xp = (x6.transpose(1, 3, 5, 0, 2, 4)
                .reshape(1, K, N * L).astype(jnp.bfloat16))
        Nb, Lb = 1, N * L
    w2 = weight.reshape(Cout, K).astype(jnp.bfloat16)

    budget = int(0.75 * vmem_limit_bytes)
    # Kernel 1: resident bf16 weight + double-buffered bf16 xp & y columns.
    k1_tile = _pick_tile(Lb, per_col_bytes=2 * (K + Cout) * 2,
                         fixed_bytes=2 * Cout * K * 2,
                         budget_bytes=budget, cap=2048)
    # Kernel 2: double-buffered bf16 in + out-dtype out columns; no matmul.
    k2_tile = _pick_tile(Lb, per_col_bytes=2 * Cout * (2 + x.dtype.itemsize),
                         fixed_bytes=0, budget_bytes=budget, cap=8192)

    y, stats = merge_conv_with_stats(xp, w2, tile_l=k1_tile,
                                     vmem_limit=vmem_limit_bytes)

    # Tiny (Cout,)-sized finalize: batch mean / biased var -> affine scale/shift.
    sums = stats.sum(axis=0)                        # (Cout, 2)
    count = jnp.float32(N * L)
    mean = sums[:, 0] / count
    # NOTE: E[y^2] - E[y]^2 can cancel when |mean| >> std; acceptable for BN on
    # a bias-free conv (mean ~ 0).  TODO(synk): shifted / two-pass variance if
    # this ever matters numerically.
    var = jnp.maximum(sums[:, 1] / count - mean * mean, 0.0)
    inv = lax.rsqrt(var + eps)
    g = gamma.astype(jnp.float32)
    b = beta.astype(jnp.float32)
    scale_c = (g * inv).reshape(Cout, 1)
    shift_c = (b - mean * g * inv).reshape(Cout, 1)

    z = apply_norm(y, scale_c, shift_c, tile_l=k2_tile,
                   out_dtype=x.dtype, vmem_limit=vmem_limit_bytes)

    if L >= 128:
        return z.reshape(N, Cout, Hp, Wp)           # NCHW order already: free
    return z.reshape(Cout, N, Hp, Wp).transpose(1, 0, 2, 3)


if __name__ == "__main__":
    # PatchMerging(in_channels=4, out_channels=8, scale=2) on x = (2, 4, 16, 16).
    N, Cin, Cout, H, W, scale = 2, 4, 8, 16, 16, 2

    key = jax.random.PRNGKey(0)
    kx, kw = jax.random.split(key, 2)

    x = jax.random.normal(kx, (N, Cin, H, W), dtype=jnp.float32)
    bound = 1.0 / (Cin * scale * scale) ** 0.5
    weight = jax.random.uniform(kw, (Cout, Cin, scale, scale), jnp.float32,
                                -bound, bound)
    gamma = jnp.ones((Cout,), jnp.float32)   # BatchNorm2d default weight
    beta = jnp.zeros((Cout,), jnp.float32)   # BatchNorm2d default bias

    out = patch_merging_forward(x, weight, gamma, beta, scale)
    out = jax.block_until_ready(out)

    # Pure-JAX reference with the same bf16 operand rounding (BN math in f32).
    xb = x.astype(jnp.bfloat16).astype(jnp.float32)
    wb = weight.astype(jnp.bfloat16).astype(jnp.float32)
    conv = lax.conv_general_dilated(
        xb, wb, window_strides=(scale, scale), padding="VALID",
        dimension_numbers=("NCHW", "OIHW", "NCHW"),
        precision=lax.Precision.HIGHEST)
    mean = conv.mean(axis=(0, 2, 3), keepdims=True)
    var = conv.var(axis=(0, 2, 3), keepdims=True)   # biased, as in training BN
    ref = (conv - mean) / jnp.sqrt(var + 1e-5) * gamma.reshape(1, Cout, 1, 1) \
        + beta.reshape(1, Cout, 1, 1)

    assert out.shape == (N, Cout, H // scale, W // scale)
    # Tolerance accounts for bf16 operands and the bf16 y intermediate.
    assert jnp.allclose(out, ref, atol=2e-2, rtol=2e-2), \
        float(jnp.max(jnp.abs(out - ref)))

    print("KERNEL_OK")
</pallas_src>

<mosaic_0001>
module attributes {stable_mosaic.version = 11 : i64} {
  func.func @_merge_stats_kernel(%arg0: i32, %arg1: i32, %arg2: memref<1x16x128xbf16, #tpu.memory_space<vmem>>, %arg3: memref<8x16xbf16, #tpu.memory_space<vmem>>, %arg4: memref<1x8x128xbf16, #tpu.memory_space<vmem>>, %arg5: memref<1x8x2xf32, #tpu.memory_space<vmem>>, %arg6: memref<8x1xf32, #tpu.memory_space<vmem>>, %arg7: memref<8x1xf32, #tpu.memory_space<vmem>>) attributes {dimension_semantics = [#tpu.dimension_semantics<parallel>, #tpu.dimension_semantics<arbitrary>], iteration_bounds = array<i64: 1, 1>, scalar_prefetch = 0 : i64, scratch_operands = 2 : i64, tpu.core_type = #tpu.core_type<tc>, window_params = [{transform_indices = @transform_0, window_bounds = array<i64: 1, 16, 128>}, {pipeline_mode = #tpu.pipeline_mode<synchronous>, transform_indices = @transform_1, window_bounds = array<i64: 8, 16>}, {transform_indices = @transform_2, window_bounds = array<i64: 1, 8, 128>}, {transform_indices = @transform_3, window_bounds = array<i64: 1, 8, 2>}]} {
    %c0_i32 = arith.constant 0 : i32
    %0 = arith.cmpi eq, %arg1, %c0_i32 : i32
    %1 = arith.extui %0 : i1 to i32
    %c0_i32_0 = arith.constant 0 : i32
    %2 = arith.cmpi ne, %1, %c0_i32_0 : i32
    scf.if %2 {
      %cst_20 = arith.constant 0.000000e+00 : f32
      %25 = vector.broadcast %cst_20 : f32 to vector<8x1xf32>
      %c0_21 = arith.constant 0 : index
      %c0_22 = arith.constant 0 : index
      %26 = vector.load %arg6[%c0_21, %c0_22] : memref<8x1xf32, #tpu.memory_space<vmem>>, vector<8x1xf32>
      tpu.vector_store %arg6[%c0_21, %c0_22], %25 {strides = array<i32>} : memref<8x1xf32, #tpu.memory_space<vmem>>, vector<8x1xf32>,
      %cst_23 = arith.constant 0.000000e+00 : f32
      %27 = vector.broadcast %cst_23 : f32 to vector<8x1xf32>
      %c0_24 = arith.constant 0 : index
      %c0_25 = arith.constant 0 : index
      %28 = vector.load %arg7[%c0_24, %c0_25] : memref<8x1xf32, #tpu.memory_space<vmem>>, vector<8x1xf32>
      tpu.vector_store %arg7[%c0_24, %c0_25], %27 {strides = array<i32>} : memref<8x1xf32, #tpu.memory_space<vmem>>, vector<8x1xf32>,
    } else {
    }
    %c0 = arith.constant 0 : index
    %c0_1 = arith.constant 0 : index
    %3 = vector.load %arg3[%c0, %c0_1] : memref<8x16xbf16, #tpu.memory_space<vmem>>, vector<8x16xbf16>
    %c0_2 = arith.constant 0 : index
    %c0_3 = arith.constant 0 : index
    %c0_4 = arith.constant 0 : index
    %4 = vector.load %arg2[%c0_2, %c0_3, %c0_4] : memref<1x16x128xbf16, #tpu.memory_space<vmem>>, vector<1x16x128xbf16>
    %5 = vector.shape_cast %4 : vector<1x16x128xbf16> to vector<16x128xbf16>
    %cst = arith.constant dense<0.000000e+00> : vector<8x128xf32>
    %6 = tpu.matmul %3, %5, %cst {dimension_numbers = #tpu.dot_dimension_numbers<[1], [0], [0], [1], [0, 0, 1, 1], [], []>} : vector<8x16xbf16>, vector<16x128xbf16>, vector<8x128xf32> -> vector<8x128xf32>
    %7 = arith.truncf %6 : vector<8x128xf32> to vector<8x128xbf16>
    %c0_5 = arith.constant 0 : index
    %c0_6 = arith.constant 0 : index
    %c0_7 = arith.constant 0 : index
    %8 = vector.load %arg4[%c0_5, %c0_6, %c0_7] : memref<1x8x128xbf16, #tpu.memory_space<vmem>>, vector<1x8x128xbf16>
    %9 = vector.shape_cast %8 : vector<1x8x128xbf16> to vector<8x128xbf16>
    %10 = vector.shape_cast %7 : vector<8x128xbf16> to vector<1x8x128xbf16>
    tpu.vector_store %arg4[%c0_5, %c0_6, %c0_7], %10 {strides = array<i32>} : memref<1x8x128xbf16, #tpu.memory_space<vmem>>, vector<1x8x128xbf16>,
    %c0_8 = arith.constant 0 : index
    %c0_9 = arith.constant 0 : index
    %11 = vector.load %arg6[%c0_8, %c0_9] : memref<8x1xf32, #tpu.memory_space<vmem>>, vector<8x1xf32>
    %cst_10 = arith.constant dense<0.000000e+00> : vector<8xf32>
    %12 = vector.multi_reduction <add>, %6, %cst_10 [1] : vector<8x128xf32> to vector<8xf32>
    %13 = vector.shape_cast %12 : vector<8xf32> to vector<8x1xf32>
    %14 = arith.addf %11, %13 : vector<8x1xf32>
    %c0_11 = arith.constant 0 : index
    %c0_12 = arith.constant 0 : index
    %15 = vector.load %arg6[%c0_11, %c0_12] : memref<8x1xf32, #tpu.memory_space<vmem>>, vector<8x1xf32>
    tpu.vector_store %arg6[%c0_11, %c0_12], %14 {strides = array<i32>} : memref<8x1xf32, #tpu.memory_space<vmem>>, vector<8x1xf32>,
    %c0_13 = arith.constant 0 : index
    %c0_14 = arith.constant 0 : index
    %16 = vector.load %arg7[%c0_13, %c0_14] : memref<8x1xf32, #tpu.memory_space<vmem>>, vector<8x1xf32>
    %17 = arith.mulf %6, %6 : vector<8x128xf32>
    %cst_15 = arith.constant dense<0.000000e+00> : vector<8xf32>
    %18 = vector.multi_reduction <add>, %17, %cst_15 [1] : vector<8x128xf32> to vector<8xf32>
    %19 = vector.shape_cast %18 : vector<8xf32> to vector<8x1xf32>
    %20 = arith.addf %16, %19 : vector<8x1xf32>
    %c0_16 = arith.constant 0 : index
    %c0_17 = arith.constant 0 : index
    %21 = vector.load %arg7[%c0_16, %c0_17] : memref<8x1xf32, #tpu.memory_space<vmem>>, vector<8x1xf32>
    tpu.vector_store %arg7[%c0_16, %c0_17], %20 {strides = array<i32>} : memref<8x1xf32, #tpu.memory_space<vmem>>, vector<8x1xf32>,
    %c0_i32_18 = arith.constant 0 : i32
    %22 = arith.cmpi eq, %arg1, %c0_i32_18 : i32
    %23 = arith.extui %22 : i1 to i32
    %c0_i32_19 = arith.constant 0 : i32
    %24 = arith.cmpi ne, %23, %c0_i32_19 : i32
    scf.if %24 {
      %c0_20 = arith.constant 0 : index
      %c0_21 = arith.constant 0 : index
      %25 = vector.load %arg6[%c0_20, %c0_21] : memref<8x1xf32, #tpu.memory_space<vmem>>, vector<8x1xf32>
      %c0_22 = arith.constant 0 : index
      %c0_23 = arith.constant 0 : index
      %c0_24 = arith.constant 0 : index
      %26 = vector.load %arg5[%c0_22, %c0_23, %c0_24] : memref<1x8x2xf32, #tpu.memory_space<vmem>>, vector<1x8x1xf32>
      %27 = vector.shape_cast %26 : vector<1x8x1xf32> to vector<8x1xf32>
      %28 = vector.shape_cast %25 : vector<8x1xf32> to vector<1x8x1xf32>
      tpu.vector_store %arg5[%c0_22, %c0_23, %c0_24], %28 {strides = array<i32>} : memref<1x8x2xf32, #tpu.memory_space<vmem>>, vector<1x8x1xf32>,
      %c0_25 = arith.constant 0 : index
      %c0_26 = arith.constant 0 : index
      %29 = vector.load %arg7[%c0_25, %c0_26] : memref<8x1xf32, #tpu.memory_space<vmem>>, vector<8x1xf32>
      %c0_27 = arith.constant 0 : index
      %c0_28 = arith.constant 0 : index
      %c1 = arith.constant 1 : index
      %30 = vector.load %arg5[%c0_27, %c0_28, %c1] : memref<1x8x2xf32, #tpu.memory_space<vmem>>, vector<1x8x1xf32>
      %31 = vector.shape_cast %30 : vector<1x8x1xf32> to vector<8x1xf32>
      %32 = vector.shape_cast %29 : vector<8x1xf32> to vector<1x8x1xf32>
      tpu.vector_store %arg5[%c0_27, %c0_28, %c1], %32 {strides = array<i32>} : memref<1x8x2xf32, #tpu.memory_space<vmem>>, vector<1x8x1xf32>,
    } else {
    }
    return
  }
  func.func @transform_0(%arg0: i32, %arg1: i32) -> (i32, i32, i32) {
    %c0_i32 = arith.constant 0 : i32
    %c0_i32_0 = arith.constant 0 : i32
    return %arg0, %c0_i32, %arg1 : i32, i32, i32
  }
  func.func @transform_1(%arg0: i32, %arg1: i32) -> (i32, i32) {
    %c0_i32 = arith.constant 0 : i32
    %c0_i32_0 = arith.constant 0 : i32
    %c0_i32_1 = arith.constant 0 : i32
    return %c0_i32, %c0_i32_0 : i32, i32
  }
  func.func @transform_2(%arg0: i32, %arg1: i32) -> (i32, i32, i32) {
    %c0_i32 = arith.constant 0 : i32
    %c0_i32_0 = arith.constant 0 : i32
    return %arg0, %c0_i32, %arg1 : i32, i32, i32
  }
  func.func @transform_3(%arg0: i32, %arg1: i32) -> (i32, i32, i32) {
    %c0_i32 = arith.constant 0 : i32
    %c0_i32_0 = arith.constant 0 : i32
    %c0_i32_1 = arith.constant 0 : i32
    return %arg0, %c0_i32, %c0_i32_0 : i32, i32, i32
  }
}

</mosaic_0001>

<bundles_post_ra>
// kernel: tpu_custom_call.1
= control target key start
LH: loop header
LB: loop body
LE: loop exit
PB: predicated region body
PF: predicated region fallthrough
CT: control target
= control target key end

     0   :  { %9 = vsyncpa [#allocation5], 0  ;;  %s313_s0 = inlined_call_operand.hbm [shape: bf16[1,16,128], index: 0, kind: input, shape index: {}]   ;;  %s314_s1 = inlined_call_operand.hbm [shape: bf16[8,16], index: 1, kind: input, shape index: {}]   ;;  %s315_s2 = inlined_call_operand.hbm [shape: bf16[1,8,128], index: 2, kind: output, shape index: {0}]   ;;  %s316_s3 = inlined_call_operand.vmem [shape: f32[1,8,2], index: 3, kind: output, shape index: {1}]  }
   0x1   :  { %10 = vsyncpa [#allocation8], 0 }
   0x2   :  { %11 = vsyncpa [#allocation6], 0  ;;  %s238_s12 = smov [#allocation4]   ;;  %s166_s16 = scalar_lea.hbm %s313_s0, 128 }
   0x3   :  { %s17_s13 = sshll.u32 %s238_s12, 4  ;;  %p167_p0 = scmp.ne.s32.totalorder %s313_s0, %s166_s16  ;;  %s18_s13 = int_to_ptr.vmem [resolvable:$true] %s17_s13 }
   0x4   :  { %p170_p1 = scmp.lt.u32.totalorder %s166_s16, %s313_s0 }
   0x6   :  { %p172_p2 = pnand %p170_p1, %p167_p0 }
   0x8   :  { %175 = shalt.err (!%p172_p2)
}
   0x9   :  { %s176_s21 = scalar_lea.vmem %s18_s13, 128  ;;  %p181_p4 = scmp.lt.s32.totalorder %s18_s13, %s18_s13 }
   0xa   :  { %p177_p3 = scmp.ne.s32.totalorder %s18_s13, %s176_s21  ;;  %p182_p5 = scmp.lt.s32.totalorder %s176_s21, %s176_s21 }
   0xc   :  { %p183_p6 = por %p182_p5, %p181_p4 }
   0xe   :  { %p184_p7 = pnand %p183_p6, %p177_p3 }
  0x10   :  { %187 = shalt.err (!%p184_p7)
}
  0x11   :  { %s239_s22 = smov 64   ;;  %s240_s23 = smov 4  }
  0x12   :  { %23 = dma.hbm_to_vmem [thread:$0]  %s313_s0, 128, %s18_s13, [#allocation5], %s239_s22, %s239_s22, %s240_s23  }
  0x13   :  { %s241_s26 = smov [#allocation7]   ;;  %s188_s30 = scalar_lea.hbm %s314_s1, 64 }
  0x14   :  { %s30_s27 = sshll.u32 %s241_s26, 4  ;;  %p189_p8 = scmp.ne.s32.totalorder %s314_s1, %s188_s30  ;;  %s31_s27 = int_to_ptr.vmem [resolvable:$true] %s30_s27 }
  0x15   :  { %p192_p9 = scmp.lt.u32.totalorder %s188_s30, %s314_s1 }
  0x17   :  { %p194_p10 = pnand %p192_p9, %p189_p8 }
  0x19   :  { %197 = shalt.err (!%p194_p10)
}
  0x1a   :  { %s198_s8 = scalar_lea.vmem %s31_s27, 64  ;;  %p203_p12 = scmp.lt.s32.totalorder %s31_s27, %s31_s27 }
  0x1b   :  { %p199_p11 = scmp.ne.s32.totalorder %s31_s27, %s198_s8  ;;  %p204_p13 = scmp.lt.s32.totalorder %s198_s8, %s198_s8 }
  0x1d   :  { %p205_p0 = por %p204_p13, %p203_p12 }
  0x1f   :  { %p206_p1 = pnand %p205_p0, %p199_p11 }
  0x21   :  { %209 = shalt.err (!%p206_p1)
}
  0x22   :  { %33 = dma.hbm_to_vmem [thread:$0]  %s314_s1, 64, %s31_s27, [#allocation8]  }
  0x23   :  { %232 = dma.done.wait [#allocation5], 128  }
  0x24   :  { %233 = vsyncadd [#allocation5], 4294967168 }
  0x25   :  { %234 = dma.done.wait [#allocation8], 64  }
  0x26   :  { %235 = vsyncadd [#allocation8], 4294967232  ;;  %vm45_vm0 = vcmask 7168   ;;  %v242_v0 = vmov 0.0   ;;  %vm243_vm1 = vmmov 0   ;;  %v165_v1 = vld [vmem:[#allocation4] sm:$0xff]  }
  0x27   :  { %46 = vst.msk [vmem:[#allocation2] sm:$0xff] %vm45_vm0, %v242_v0  ;;  %47 = vst.msk [vmem:[#allocation3] sm:$0xff] %vm45_vm0, %v242_v0  ;;  %151 = vmatprep.subr.bf16.mxu0 %v242_v0  ;;  %153 = vmatprep.mubr.msk.bf16.mxu0 %vm243_vm1, %v242_v0  ;;  %v48_v2 = vld [vmem:[#allocation7] sm:$0xf]  ;;  %vm57_vm2 = vcmask 130048   ;;  %s244_s1 = smov [#allocation9]  }
  0x28   :  { %152 = vmatpush3.bf16.msra.mxu0 %v165_v1  ;;  %s133_s10 = sshll.u32 %s244_s1, 4  ;;  %s134_s10 = int_to_ptr.vmem [resolvable:$true] %s133_s10 }
  0x29   :  { %s210_s11 = scalar_lea.vmem %s134_s10, 64  ;;  %p215_p3 = scmp.lt.s32.totalorder %s134_s10, %s134_s10 }
  0x2a   :  { %p211_p2 = scmp.ne.s32.totalorder %s134_s10, %s210_s11  ;;  %p216_p4 = scmp.lt.s32.totalorder %s210_s11, %s210_s11 }
  0x2b   :  { %154 = vmatmul.mubr.msk.bf16.vlgmr.msra.gmra.mrb[0].mxu0 %vm57_vm2, %v48_v2 }
  0x2c   :  { %p217_p5 = por %p216_p4, %p215_p3 }
  0x2e   :  { %v109_v9 = vld [vmem:[#allocation3] sm:$0xff]  ;;  %p218_p6 = pnand %p217_p5, %p211_p2 }
  0xfe   :  { %v95_v3 = vpop.f32.mrb[0].mxu0 }
  0xff   :  { %v101_v4 = vpack.c.bf16 %v95_v3, %v95_v3  ;;  %v155_v5 = vpop.f32.mrb[1].mxu0  ;;  %v110_v6 = vmul.f32 %v95_v3, %v95_v3 }
 0x100   :  { %v98_v7 = vpop.f32.mrb[2].mxu0 }
 0x101   :  { %102 = vst [vmem:[#allocation9] sm:$0xf] %v101_v4  ;;  %111 = vadd.xlane.f32.xlu0 %v110_v6  ;;  %v156_v8 = vpop.f32.mrb[3].mxu0 }
 0x105   :  { %104 = vadd.xlane.f32.xlu0 %v95_v3 }
 0x106   :  { %221 = shalt.err (!%p218_p6)
}
 0x107   :  { %s222_s14 = scalar_lea.hbm %s315_s2, 64 }
 0x108   :  { %p223_p7 = scmp.ne.s32.totalorder %s315_s2, %s222_s14  ;;  %p226_p8 = scmp.lt.u32.totalorder %s222_s14, %s315_s2 }
 0x10a   :  { %p228_p9 = pnand %p226_p8, %p223_p7 }
 0x10c   :  { %231 = shalt.err (!%p228_p9)
}
 0x10d   :  { %136 = dma.vmem_to_hbm [thread:$0]  %s134_s10, 64, %s315_s2, [#allocation6]   ;;  %v103_v12 = vld [vmem:[#allocation2] sm:$0xff]  ;;  %vm125_vm3 = vcmask 15368  }
 0x10e   :  { %s245_s21 = smov 1  }
 0x18e   :  { %v112_v10 = vpop.xlane.xlu0 %111 }
 0x18f   :  { %v113_v11 = vadd.f32 %v112_v10, %v109_v9 }
 0x191   :  { %114 = vst.msk [vmem:[#allocation3] sm:$0xff] %vm45_vm0, %v113_v11 }
 0x192   :  { %v105_v13 = vpop.xlane.xlu0 %104 }
 0x193   :  { %v106_v14 = vadd.f32 %v105_v13, %v103_v12 }
 0x195   :  { %108 = vst.msk [vmem:[#allocation2] sm:$0xff] %vm45_vm0, %v106_v14 }
 0x198   :  { %v120_v15 = vld [vmem:[#allocation3] sm:$0xff] }
 0x199   :  { %122 = vrot.lane.b32.xlu1 %v120_v15, %s245_s21 }
 0x19c   :  { %v118_v16 = vld [vmem:[#allocation2] sm:$0xff] }
 0x19d   :  { %119 = vst.msk [vmem:[%s316_s3] sm:$0xff] %vm45_vm0, %v118_v16 }
 0x20b   :  { %v123_v17 = vpop.permute.xlu1 %122 }
 0x20c   :  { %126 = vst.msk [vmem:[%s316_s3] sm:$0xff] %vm125_vm3, %v123_v17 }
 0x20d   :  { %236 = dma.done.wait [#allocation6], 64  }
 0x20e   :  { %237 = vsyncadd [#allocation6], 4294967232 }
 0x20f   :  { %144 = vsyncpa [#allocation5], 1 }
 0x210   :  { %145 = vsyncpa [#allocation8], 1 }
 0x211   :  { %146 = vsyncpa [#allocation6], 1 }

</bundles_post_ra>
